<compile_context>
chip_gen: v5e
topology: v5e:2x2
jax: 0.10.0
libtpu: 0.0.40
codegen_flags: <defaults>
</compile_context>

<pallas_src>
import jax
import jax.numpy as jnp
from jax.experimental import pallas as pl
from jax.experimental.pallas import tpu as pltpu


LANES = 128


def _round_up(x, m):
    return ((x + m - 1) // m) * m


def _qnet_kernel(xt_ref, w1_ref, b1_ref, w2_ref, b2_ref, w3_ref, b3_ref, qt_ref):
    # Batch lives on the lane (last) axis of every tile.
    xt = xt_ref[...]                                                          # (S, TB)
    # fc1 + relu
    h1 = jnp.dot(w1_ref[...], xt, preferred_element_type=jnp.float32)        # (H, TB)
    h1 = jnp.maximum(h1 + b1_ref[...], 0.0)
    # fc2 + relu
    h2 = jnp.dot(w2_ref[...], h1, preferred_element_type=jnp.float32)        # (H, TB)
    h2 = jnp.maximum(h2 + b2_ref[...], 0.0)
    # fc3 (Q-values), written at natural width: (A, TB), lane-dense, no padding
    qt_ref[...] = (
        jnp.dot(w3_ref[...], h2, preferred_element_type=jnp.float32) + b3_ref[...]
    )


def prepare_params(params):
    """One-time conversion to kernel layout: W as (out, in), biases as column vectors.

    Hoisted out of the per-call hot path per perf review.
    `params` are in the reference layout: W as (in, out), b as (out,).
    """
    w1, b1, w2, b2, w3, b3 = params
    return (
        jnp.asarray(w1, jnp.float32).T,                 # (H, S)
        jnp.asarray(b1, jnp.float32).reshape(-1, 1),    # (H, 1)
        jnp.asarray(w2, jnp.float32).T,                 # (H, H)
        jnp.asarray(b2, jnp.float32).reshape(-1, 1),    # (H, 1)
        jnp.asarray(w3, jnp.float32).T,                 # (A, H)
        jnp.asarray(b3, jnp.float32).reshape(-1, 1),    # (A, 1)
    )


def _choose_tb(batch, tb_cap):
    """Batch tile (lanes): multiple of 128, capped, and >=2 grid steps for medium+ batches."""
    tb_cap = max(_round_up(tb_cap, LANES), LANES)
    full = _round_up(max(batch, 1), LANES)
    if full <= LANES:
        return LANES
    # Aim for at least 2 grid steps so the "parallel" axis can shard across both
    # TensorCores on v7x (no-op on v5e/v6e); cap the tile to amortize step overhead
    # without over-padding small batches.
    half = _round_up((batch + 1) // 2, LANES)
    return min(tb_cap, half)


def qnet_forward_pallas(state, kernel_params, *, tb=8192):
    """Fused QNet forward. `kernel_params` from prepare_params(). Returns (B, action_num)."""
    w1t, b1c, w2t, b2c, w3t, b3c = kernel_params
    H, S = w1t.shape
    A = w3t.shape[0]
    B = state.shape[0]
    assert state.shape[1] == S

    TB = _choose_tb(B, tb)
    B_pad = _round_up(max(B, 1), TB)

    xt = state.astype(jnp.float32).T                    # (S, B): batch on lanes
    if B_pad != B:
        xt = jnp.pad(xt, ((0, 0), (0, B_pad - B)))      # padded cols sliced off below

    grid = (B_pad // TB,)

    weight_bytes = 4 * (H * S + H + H * H + H + A * H + A)
    cost = pl.CostEstimate(
        flops=2 * B_pad * (S * H + H * H + H * A),
        transcendentals=0,
        bytes_accessed=B_pad * (S + A) * 4 + weight_bytes,
    )

    qt = pl.pallas_call(
        _qnet_kernel,
        out_shape=jax.ShapeDtypeStruct((A, B_pad), jnp.float32),
        grid=grid,
        in_specs=[
            pl.BlockSpec((S, TB), lambda i: (0, i)),    # x^T: batch-tiled, pipelined
            pl.BlockSpec((H, S), lambda i: (0, 0)),     # W1 (out,in): VMEM-resident
            pl.BlockSpec((H, 1), lambda i: (0, 0)),     # b1 column
            pl.BlockSpec((H, H), lambda i: (0, 0)),     # W2
            pl.BlockSpec((H, 1), lambda i: (0, 0)),     # b2
            pl.BlockSpec((A, H), lambda i: (0, 0)),     # W3
            pl.BlockSpec((A, 1), lambda i: (0, 0)),     # b3
        ],
        out_specs=pl.BlockSpec((A, TB), lambda i: (0, i)),
        compiler_params=pltpu.CompilerParams(
            dimension_semantics=("parallel",),          # shards batch tiles across v7x TCs
        ),
        cost_estimate=cost,
    )(xt, w1t, b1c, w2t, b2c, w3t, b3c)

    return qt[:, :B].T                                  # (B, A)


def qnet_forward_ref(state, params):
    """Pure-JAX reference (also the cheap path for tiny batches). Params in (in,out) layout."""
    w1, b1, w2, b2, w3, b3 = params
    h1 = jnp.maximum(state @ w1 + b1, 0.0)
    h2 = jnp.maximum(h1 @ w2 + b2, 0.0)
    return h2 @ w3 + b3


def qnet_forward(state, params, kernel_params=None, *, min_pallas_batch=512):
    """Dispatch: the Pallas kernel pays off only for large rollout batches."""
    if state.shape[0] < min_pallas_batch:
        return qnet_forward_ref(state, params)
    if kernel_params is None:
        kernel_params = prepare_params(params)  # prefer passing pre-prepared params
    return qnet_forward_pallas(state, kernel_params)


def init_params(key, state_dim, action_num, hidden=16):
    """Deterministic synthetic parameters (shapes mirror the nn.Linear layers, transposed)."""
    ks = jax.random.split(key, 6)
    w1 = 0.3 * jax.random.normal(ks[0], (state_dim, hidden), jnp.float32)
    b1 = 0.1 * jax.random.normal(ks[1], (hidden,), jnp.float32)
    w2 = 0.3 * jax.random.normal(ks[2], (hidden, hidden), jnp.float32)
    b2 = 0.1 * jax.random.normal(ks[3], (hidden,), jnp.float32)
    w3 = 0.3 * jax.random.normal(ks[4], (hidden, action_num), jnp.float32)
    b3 = 0.1 * jax.random.normal(ks[5], (action_num,), jnp.float32)
    return (w1, b1, w2, b2, w3, b3)


if __name__ == "__main__":
    key = jax.random.PRNGKey(0)
    k_param, k_state = jax.random.split(key, 2)

    batch = 8
    state_dim = 4      # e.g. CartPole observation dim
    action_num = 2

    params = init_params(k_param, state_dim, action_num)
    kernel_params = prepare_params(params)      # hoisted one-time param prep
    state = jax.random.normal(k_state, (batch, state_dim), jnp.float32)

    # Exercise the Pallas path directly (the dispatcher would route B=8 to pure JAX).
    q = qnet_forward_pallas(state, kernel_params)
    jax.block_until_ready(q)

    # Correctness check against the pure-JAX reference.
    q_ref = qnet_forward_ref(state, params)
    assert q.shape == (batch, action_num)
    assert jnp.allclose(q, q_ref, atol=1e-4, rtol=1e-4), (q, q_ref)

    print("KERNEL_OK")
</pallas_src>

<mosaic_0001>
module attributes {stable_mosaic.version = 11 : i64} {
  func.func @_qnet_kernel(%arg0: i32, %arg1: memref<4x128xf32, #tpu.memory_space<vmem>>, %arg2: memref<16x4xf32, #tpu.memory_space<vmem>>, %arg3: memref<16x1xf32, #tpu.memory_space<vmem>>, %arg4: memref<16x16xf32, #tpu.memory_space<vmem>>, %arg5: memref<16x1xf32, #tpu.memory_space<vmem>>, %arg6: memref<2x16xf32, #tpu.memory_space<vmem>>, %arg7: memref<2x1xf32, #tpu.memory_space<vmem>>, %arg8: memref<2x128xf32, #tpu.memory_space<vmem>>) attributes {dimension_semantics = [#tpu.dimension_semantics<parallel>], iteration_bounds = array<i64: 1>, scalar_prefetch = 0 : i64, scratch_operands = 0 : i64, tpu.core_type = #tpu.core_type<tc>, window_params = [{transform_indices = @transform_0, window_bounds = array<i64: 4, 128>}, {pipeline_mode = #tpu.pipeline_mode<synchronous>, transform_indices = @transform_1, window_bounds = array<i64: 16, 4>}, {pipeline_mode = #tpu.pipeline_mode<synchronous>, transform_indices = @transform_2, window_bounds = array<i64: 16, 1>}, {pipeline_mode = #tpu.pipeline_mode<synchronous>, transform_indices = @transform_3, window_bounds = array<i64: 16, 16>}, {pipeline_mode = #tpu.pipeline_mode<synchronous>, transform_indices = @transform_4, window_bounds = array<i64: 16, 1>}, {pipeline_mode = #tpu.pipeline_mode<synchronous>, transform_indices = @transform_5, window_bounds = array<i64: 2, 16>}, {pipeline_mode = #tpu.pipeline_mode<synchronous>, transform_indices = @transform_6, window_bounds = array<i64: 2, 1>}, {transform_indices = @transform_7, window_bounds = array<i64: 2, 128>}]} {
    %c0 = arith.constant 0 : index
    %c0_0 = arith.constant 0 : index
    %0 = vector.load %arg1[%c0, %c0_0] : memref<4x128xf32, #tpu.memory_space<vmem>>, vector<4x128xf32>
    %c0_1 = arith.constant 0 : index
    %c0_2 = arith.constant 0 : index
    %1 = vector.load %arg2[%c0_1, %c0_2] : memref<16x4xf32, #tpu.memory_space<vmem>>, vector<16x4xf32>
    %cst = arith.constant dense<0.000000e+00> : vector<16x128xf32>
    %2 = tpu.matmul %1, %0, %cst {dimension_numbers = #tpu.dot_dimension_numbers<[1], [0], [0], [1], [0, 0, 1, 1], [], []>} : vector<16x4xf32>, vector<4x128xf32>, vector<16x128xf32> -> vector<16x128xf32>
    %c0_3 = arith.constant 0 : index
    %c0_4 = arith.constant 0 : index
    %3 = vector.load %arg3[%c0_3, %c0_4] : memref<16x1xf32, #tpu.memory_space<vmem>>, vector<16x1xf32>
    %4 = vector.broadcast %3 : vector<16x1xf32> to vector<16x128xf32>
    %5 = arith.addf %2, %4 : vector<16x128xf32>
    %cst_5 = arith.constant 0.000000e+00 : f32
    %6 = vector.broadcast %cst_5 : f32 to vector<16x128xf32>
    %7 = arith.maximumf %5, %6 : vector<16x128xf32>
    %c0_6 = arith.constant 0 : index
    %c0_7 = arith.constant 0 : index
    %8 = vector.load %arg4[%c0_6, %c0_7] : memref<16x16xf32, #tpu.memory_space<vmem>>, vector<16x16xf32>
    %cst_8 = arith.constant dense<0.000000e+00> : vector<16x128xf32>
    %9 = tpu.matmul %8, %7, %cst_8 {dimension_numbers = #tpu.dot_dimension_numbers<[1], [0], [0], [1], [0, 0, 1, 1], [], []>} : vector<16x16xf32>, vector<16x128xf32>, vector<16x128xf32> -> vector<16x128xf32>
    %c0_9 = arith.constant 0 : index
    %c0_10 = arith.constant 0 : index
    %10 = vector.load %arg5[%c0_9, %c0_10] : memref<16x1xf32, #tpu.memory_space<vmem>>, vector<16x1xf32>
    %11 = vector.broadcast %10 : vector<16x1xf32> to vector<16x128xf32>
    %12 = arith.addf %9, %11 : vector<16x128xf32>
    %cst_11 = arith.constant 0.000000e+00 : f32
    %13 = vector.broadcast %cst_11 : f32 to vector<16x128xf32>
    %14 = arith.maximumf %12, %13 : vector<16x128xf32>
    %c0_12 = arith.constant 0 : index
    %c0_13 = arith.constant 0 : index
    %15 = vector.load %arg6[%c0_12, %c0_13] : memref<2x16xf32, #tpu.memory_space<vmem>>, vector<2x16xf32>
    %cst_14 = arith.constant dense<0.000000e+00> : vector<2x128xf32>
    %16 = tpu.matmul %15, %14, %cst_14 {dimension_numbers = #tpu.dot_dimension_numbers<[1], [0], [0], [1], [0, 0, 1, 1], [], []>} : vector<2x16xf32>, vector<16x128xf32>, vector<2x128xf32> -> vector<2x128xf32>
    %c0_15 = arith.constant 0 : index
    %c0_16 = arith.constant 0 : index
    %17 = vector.load %arg7[%c0_15, %c0_16] : memref<2x1xf32, #tpu.memory_space<vmem>>, vector<2x1xf32>
    %18 = vector.broadcast %17 : vector<2x1xf32> to vector<2x128xf32>
    %19 = arith.addf %16, %18 : vector<2x128xf32>
    %c0_17 = arith.constant 0 : index
    %c0_18 = arith.constant 0 : index
    %20 = vector.load %arg8[%c0_17, %c0_18] : memref<2x128xf32, #tpu.memory_space<vmem>>, vector<2x128xf32>
    tpu.vector_store %arg8[%c0_17, %c0_18], %19 {strides = array<i32>} : memref<2x128xf32, #tpu.memory_space<vmem>>, vector<2x128xf32>,
    return
  }
  func.func @transform_0(%arg0: i32) -> (i32, i32) {
    %c0_i32 = arith.constant 0 : i32
    %c0_i32_0 = arith.constant 0 : i32
    return %c0_i32, %arg0 : i32, i32
  }
  func.func @transform_1(%arg0: i32) -> (i32, i32) {
    %c0_i32 = arith.constant 0 : i32
    %c0_i32_0 = arith.constant 0 : i32
    %c0_i32_1 = arith.constant 0 : i32
    return %c0_i32, %c0_i32_0 : i32, i32
  }
  func.func @transform_2(%arg0: i32) -> (i32, i32) {
    %c0_i32 = arith.constant 0 : i32
    %c0_i32_0 = arith.constant 0 : i32
    %c0_i32_1 = arith.constant 0 : i32
    return %c0_i32, %c0_i32_0 : i32, i32
  }
  func.func @transform_3(%arg0: i32) -> (i32, i32) {
    %c0_i32 = arith.constant 0 : i32
    %c0_i32_0 = arith.constant 0 : i32
    %c0_i32_1 = arith.constant 0 : i32
    return %c0_i32, %c0_i32_0 : i32, i32
  }
  func.func @transform_4(%arg0: i32) -> (i32, i32) {
    %c0_i32 = arith.constant 0 : i32
    %c0_i32_0 = arith.constant 0 : i32
    %c0_i32_1 = arith.constant 0 : i32
    return %c0_i32, %c0_i32_0 : i32, i32
  }
  func.func @transform_5(%arg0: i32) -> (i32, i32) {
    %c0_i32 = arith.constant 0 : i32
    %c0_i32_0 = arith.constant 0 : i32
    %c0_i32_1 = arith.constant 0 : i32
    return %c0_i32, %c0_i32_0 : i32, i32
  }
  func.func @transform_6(%arg0: i32) -> (i32, i32) {
    %c0_i32 = arith.constant 0 : i32
    %c0_i32_0 = arith.constant 0 : i32
    %c0_i32_1 = arith.constant 0 : i32
    return %c0_i32, %c0_i32_0 : i32, i32
  }
  func.func @transform_7(%arg0: i32) -> (i32, i32) {
    %c0_i32 = arith.constant 0 : i32
    %c0_i32_0 = arith.constant 0 : i32
    return %c0_i32, %arg0 : i32, i32
  }
}

</mosaic_0001>

<bundles_post_ra>
// kernel: tpu_custom_call.1
= control target key start
LH: loop header
LB: loop body
LE: loop exit
PB: predicated region body
PF: predicated region fallthrough
CT: control target
= control target key end

     0   :  { %vm49_vm0 = vcmask 1043456   ;;  %vm42_vm1 = vcmask 31744   ;;  %v210_v2 = vmov 0   ;;  %s291_s0 = inlined_call_operand.vmem [shape: f32[4,128], index: 0, kind: input, shape index: {}]   ;;  %s292_s1 = inlined_call_operand.vmem [shape: f32[16,4], index: 1, kind: input, shape index: {}]   ;;  %s293_s2 = inlined_call_operand.vmem [shape: f32[16,1], index: 2, kind: input, shape index: {}]   ;;  %s294_s3 = inlined_call_operand.vmem [shape: f32[16,16], index: 3, kind: input, shape index: {}]   ;;  %s295_s4 = inlined_call_operand.vmem [shape: f32[16,1], index: 4, kind: input, shape index: {}]   ;;  %s296_s5 = inlined_call_operand.vmem [shape: f32[2,16], index: 5, kind: input, shape index: {}]   ;;  %s297_s6 = inlined_call_operand.vmem [shape: f32[2,1], index: 6, kind: input, shape index: {}]   ;;  %s298_s7 = inlined_call_operand.hbm [shape: f32[2,128], index: 7, kind: output, shape index: {}]  }
   0x1   :  { %v27_v0 = vld [vmem:[%s291_s0] sm:$0xf]  ;;  %181 = vset.pattern.permute.xlu0 %v210_v2  ;;  %v31_v3 = vld [vmem:[%s293_s2 + $0x8] sm:$0xff] }
   0x2   :  { %v28_v1 = vld [vmem:[%s292_s1] sm:$0xff]  ;;  %171 = vmatpush.msk.msra.mxu0 %vm49_vm0, %v27_v0  ;;  %39 = vperm.xlu0 %181, %v31_v3  }
   0x3   :  { %172 = vmatmul.msk.f32.vlgmr.msra.gmra.mxu0 %vm42_vm1, %v28_v1 }
   0x4   :  { %12 = vsyncpa [#allocation3], 0  ;;  %182 = vset.pattern.permute.xlu1 %v210_v2  ;;  %183 = vset.pattern.permute.xlu2 %v210_v2  ;;  %v29_v4 = vld [vmem:[%s292_s1 + $0x8] sm:$0xff]  ;;  %v30_v5 = vld [vmem:[%s293_s2] sm:$0xff]  ;;  %vm92_vm2 = vcmask 130048   ;;  %s211_s18 = smov [#allocation2]  }
   0x5   :  { %v81_v6 = vld [vmem:[%s295_s4 + $0x8] sm:$0xff]  ;;  %v80_v7 = vld [vmem:[%s295_s4] sm:$0xff]  ;;  %s162_s21 = sshll.u32 %s298_s7, 4  ;;  %s163_s21 = int_to_ptr.hbm [resolvable:$true] %s162_s21 }
   0x6   :  { %89 = vperm.xlu1 %182, %v81_v6   ;;  %v78_v16 = vld [vmem:[%s294_s3] sm:$0xff]  ;;  %v79_v17 = vld [vmem:[%s294_s3 + $0x8] sm:$0xff] }
   0x7   :  { %v125_v18 = vld [vmem:[%s297_s6] sm:$0x3]  ;;  %s160_s6 = sshll.u32 %s211_s18, 4  ;;  %s161_s6 = int_to_ptr.vmem [resolvable:$true] %s160_s6 }
   0x8   :  { %128 = vperm.xlu2 %183, %v125_v18   ;;  %v124_v27 = vld [vmem:[%s296_s5] sm:$0x3] }
   0xa   :  { %34 = vperm.xlu0 %181, %v30_v5  }
   0xb   :  { %173 = vmatmul.msk.f32.gmra.mxu0 %vm42_vm1, %v29_v4 }
   0xe   :  { %84 = vperm.xlu1 %182, %v80_v7  }
  0x62   :  { %v129_v28 = vpop.permute.xlu2 %128 }
  0x74   :  { %v40_v8 = vpop.permute.xlu0 %39 }
  0x78   :  { %v90_v19 = vpop.permute.xlu1 %89 }
  0x7c   :  { %v35_v10 = vpop.permute.xlu0 %34 }
  0x80   :  { %v70_v9 = vpop.f32.mrf.mxu0  ;;  %v85_v20 = vpop.permute.xlu1 %84 }
  0x81   :  { %v71_v12 = vadd.f32 %v70_v9, %v35_v10 }
  0x83   :  { %v76_v15 = vmax.f32 %v71_v12, 0.0 }
  0x88   :  { %v73_v11 = vpop.f32.mrf.mxu0 }
  0x89   :  { %v74_v13 = vadd.f32 %v73_v11, %v40_v8 }
  0x8b   :  { %v77_v14 = vmax.f32 %v74_v13, 0.0 }
  0x8d   :  { %113 = vmatpush.msra.mxu1 %v77_v14  ;;  %177 = vmatpush.msra.mxu3 %v77_v14 }
  0x8f   :  { %114 = vmatpush.msra.mxu1 %v76_v15  ;;  %178 = vmatpush.msra.mxu3 %v76_v15 }
  0x90   :  { %174 = vmatmul.msk.f32.vlgmr.msra.gmra.mxu1 %vm92_vm2, %v78_v16  ;;  %175 = vmatmul.msk.f32.vlgmr.msra.gmra.mxu3 %vm92_vm2, %v79_v17 }
 0x10d   :  { %v116_v21 = vpop.f32.mrf.mxu1 }
 0x10e   :  { %v117_v23 = vadd.f32 %v116_v21, %v85_v20 }
 0x110   :  { %v122_v26 = vmax.f32 %v117_v23, 0.0 }
 0x113   :  { %v119_v22 = vpop.f32.mrf.mxu3 }
 0x114   :  { %v120_v24 = vadd.f32 %v119_v22, %v90_v19 }
 0x116   :  { %v123_v25 = vmax.f32 %v120_v24, 0.0 }
 0x118   :  { %148 = vmatpush.msra.mxu2 %v123_v25 }
 0x11a   :  { %149 = vmatpush.msra.mxu2 %v122_v26 }
 0x11b   :  { %176 = vmatmul.msk.f32.vlgmr.msra.gmra.mxu2 %vm92_vm2, %v124_v27 }
 0x19e   :  { %v151_v29 = vpop.f32.mrf.mxu2 }
 0x19f   :  { %v152_v30 = vadd.f32 %v151_v29, %v129_v28 }
 0x1a1   :  { %154 = vst [vmem:[#allocation2] sm:$0x3] %v152_v30 }
 0x1a2   :  { %165 = dma.vmem_to_hbm [thread:$0]  %s161_s6, 32, %s163_s21, [#allocation3]  }
 0x1a3   :  { %208 = dma.done.wait [#allocation3], 32  }
 0x1a4   :  { %209 = vsyncadd [#allocation3], 4294967264 }
 0x1a5   :  { %170 = vsyncpa [#allocation3], 1 }

</bundles_post_ra>
